<compile_context>
chip_gen: v7x
topology: tpu7x:2x2x1
jax: 0.10.0
libtpu: 0.0.40
codegen_flags: <defaults>
</compile_context>

<pallas_src>
import functools

import jax
import jax.numpy as jnp
from jax import lax
from jax.experimental import pallas as pl
from jax.experimental.pallas import tpu as pltpu


def _round_up(x, m):
    return (x + m - 1) // m * m


def _sae_kernel(x_ref, wt_ref, w_ref, bpre_ref, b1_ref, out_ref, *, k, matmul_dtype):
    x = x_ref[...].astype(jnp.float32)          # (tm, D)
    bpre = bpre_ref[...]                        # (1, D) f32
    b1 = b1_ref[...]                            # (1, H) f32

    # Encoder: (x - b_pre) @ WT + b1 on the MXU — bf16 inputs, f32 accumulation.
    xc = x - bpre
    pre = jnp.dot(xc.astype(matmul_dtype), wt_ref[...],
                  preferred_element_type=jnp.float32) + b1      # (tm, H) f32

    # Top-k via threshold: one XLU max-reduction per iteration, no index iota,
    # no min-reduce.  Exact top-k for distinct values (ties are measure-zero for
    # float activations).  Padded hidden columns carry a huge negative bias so
    # they never reach the top-k.
    neg = jnp.finfo(jnp.float32).min

    def _mask_out_max(_, v):
        m = jnp.max(v, axis=-1, keepdims=True)
        return jnp.where(v == m, neg, v)

    masked = lax.fori_loop(0, k - 1, _mask_out_max, pre, unroll=(k <= 8))
    kth = jnp.max(masked, axis=-1, keepdims=True)               # k-th largest per row
    acts = jnp.where(pre >= kth, pre, 0.0)                      # k-sparse acts (f32)

    # Decoder: acts @ W + b_pre on the MXU (dense matmul with k-sparse rows is
    # identical to the einsum over the gathered top-k rows of W).
    x_hat = jnp.dot(acts.astype(matmul_dtype), w_ref[...],
                    preferred_element_type=jnp.float32) + bpre
    out_ref[...] = x_hat.astype(out_ref.dtype)


def sae_forward(x, W, WT, pre_encode_b, b1, k, *, tm=256, matmul_dtype=jnp.bfloat16):
    T, D = x.shape
    H = W.shape[0]
    assert WT.shape == (D, H)
    assert 1 <= k <= H

    # Lane/sublane-friendly padding: D, H -> multiples of 128, tokens -> multiple
    # of the (8-aligned) token tile.  Keeps the output store lane-dense and the
    # MXU fully fed even for odd model sizes.
    D_p = _round_up(D, 128)
    H_p = _round_up(H, 128)
    tm_eff = min(_round_up(tm, 8), _round_up(T, 8))
    T_p = _round_up(T, tm_eff)

    neg = float(jnp.finfo(jnp.float32).min)

    x_p = jnp.pad(x, ((0, T_p - T), (0, D_p - D)))
    W_p = jnp.pad(W.astype(matmul_dtype), ((0, H_p - H), (0, D_p - D)))
    WT_p = jnp.pad(WT.astype(matmul_dtype), ((0, D_p - D), (0, H_p - H)))
    bpre_p = jnp.pad(pre_encode_b.astype(jnp.float32), (0, D_p - D)).reshape(1, D_p)
    # Padded hidden units get a huge negative bias so they never enter the top-k.
    b1_p = jnp.pad(b1.astype(jnp.float32), (0, H_p - H),
                   constant_values=neg).reshape(1, H_p)

    # Explicit scoped-VMEM budget: single-buffered weights + double-buffered
    # x/out tiles + biases + elementwise temporaries, with headroom.
    w_bytes = jnp.dtype(matmul_dtype).itemsize
    io_bytes = jnp.dtype(x.dtype).itemsize
    est = (
        2 * D_p * H_p * w_bytes                      # W + WT, single-buffered
        + 2 * 2 * tm_eff * D_p * io_bytes            # x tile + out tile, double-buffered
        + 2 * 2 * (D_p + H_p) * 4                    # biases
        + 8 * tm_eff * H_p * 4                       # pre / masked / acts temporaries
        + (8 << 20)                                  # compiler scratch headroom
    )
    vmem_limit = int(min(128 << 20, max(32 << 20, est)))

    kernel = functools.partial(_sae_kernel, k=k, matmul_dtype=matmul_dtype)
    out = pl.pallas_call(
        kernel,
        out_shape=jax.ShapeDtypeStruct((T_p, D_p), x.dtype),
        grid_spec=pltpu.PrefetchScalarGridSpec(
            num_scalar_prefetch=0,
            grid=(T_p // tm_eff,),
            in_specs=[
                pl.BlockSpec((tm_eff, D_p), lambda i: (i, 0)),          # x token tile
                pl.BlockSpec((D_p, H_p), lambda i: (0, 0),              # WT, resident
                             pipeline_mode=pl.Buffered(1)),
                pl.BlockSpec((H_p, D_p), lambda i: (0, 0),              # W, resident
                             pipeline_mode=pl.Buffered(1)),
                pl.BlockSpec((1, D_p), lambda i: (0, 0)),               # pre_encode_b
                pl.BlockSpec((1, H_p), lambda i: (0, 0)),               # b1
            ],
            out_specs=pl.BlockSpec((tm_eff, D_p), lambda i: (i, 0)),
        ),
        compiler_params=pltpu.CompilerParams(
            dimension_semantics=("parallel",),
            vmem_limit_bytes=vmem_limit),
    )(x_p, WT_p, W_p, bpre_p, b1_p)

    return out[:T, :D]


def sae_reference(x, W, WT, pre_encode_b, b1, k, matmul_dtype=jnp.float32):
    """Pure-JAX reference.  matmul_dtype mirrors the kernel's MXU input dtype."""
    xc = (x - pre_encode_b).astype(matmul_dtype)
    pre = jnp.dot(xc, WT.astype(matmul_dtype),
                  preferred_element_type=jnp.float32) + b1
    vals, idx = lax.top_k(pre, k)                                    # (T, k)
    gathered = W[idx].astype(matmul_dtype)                           # (T, k, D)
    x_hat = jnp.einsum("tk,tkd->td", vals.astype(matmul_dtype), gathered,
                       preferred_element_type=jnp.float32) + pre_encode_b
    return x_hat


if __name__ == "__main__":
    # Small shapes consistent with the module: tokens=16, input_size=32,
    # hidden_size=64, k=4.
    T, D, H, K = 16, 32, 64, 4

    key = jax.random.PRNGKey(0)
    kW, kbp, kb1, kx = jax.random.split(key, 4)

    initial_W = jax.random.normal(kW, (H, D), dtype=jnp.float32) * 0.01
    W = initial_W
    WT = initial_W.T                                # same init as the PyTorch module
    pre_encode_b = jax.random.normal(kbp, (D,), dtype=jnp.float32) * 0.1
    b1 = jax.random.normal(kb1, (H,), dtype=jnp.float32) * 0.1

    x = jax.random.normal(kx, (T, D), dtype=jnp.float32)

    out = jax.block_until_ready(sae_forward(x, W, WT, pre_encode_b, b1, K))
    assert out.shape == (T, D)

    # Tight check against a reference using the same bf16-input / f32-accumulate
    # matmul precision as the kernel.
    ref_bf16 = sae_reference(x, W, WT, pre_encode_b, b1, K, matmul_dtype=jnp.bfloat16)
    assert jnp.allclose(out, ref_bf16, atol=1e-4, rtol=1e-4), (
        float(jnp.max(jnp.abs(out - ref_bf16))))

    # Loose check against the full-f32 reference (bf16 MXU inputs are a precision
    # trade, not a semantics change).
    ref_f32 = sae_reference(x, W, WT, pre_encode_b, b1, K, matmul_dtype=jnp.float32)
    assert jnp.allclose(out, ref_f32, atol=5e-3, rtol=5e-2), (
        float(jnp.max(jnp.abs(out - ref_f32))))

    print("KERNEL_OK")
</pallas_src>

<mosaic_0001>
module attributes {stable_mosaic.version = 11 : i64} {
  func.func @_sae_kernel(%arg0: i32, %arg1: memref<16x128xf32, #tpu.memory_space<vmem>>, %arg2: memref<128x128xbf16, #tpu.memory_space<vmem>>, %arg3: memref<128x128xbf16, #tpu.memory_space<vmem>>, %arg4: memref<1x128xf32, #tpu.memory_space<vmem>>, %arg5: memref<1x128xf32, #tpu.memory_space<vmem>>, %arg6: memref<16x128xf32, #tpu.memory_space<vmem>>) attributes {dimension_semantics = [#tpu.dimension_semantics<parallel>], iteration_bounds = array<i64: 1>, scalar_prefetch = 0 : i64, scratch_operands = 0 : i64, tpu.core_type = #tpu.core_type<tc>, window_params = [{transform_indices = @transform_0, window_bounds = array<i64: 16, 128>}, {pipeline_mode = #tpu.pipeline_mode<synchronous>, transform_indices = @transform_1, window_bounds = array<i64: 128, 128>}, {pipeline_mode = #tpu.pipeline_mode<synchronous>, transform_indices = @transform_2, window_bounds = array<i64: 128, 128>}, {pipeline_mode = #tpu.pipeline_mode<synchronous>, transform_indices = @transform_3, window_bounds = array<i64: 1, 128>}, {pipeline_mode = #tpu.pipeline_mode<synchronous>, transform_indices = @transform_4, window_bounds = array<i64: 1, 128>}, {transform_indices = @transform_5, window_bounds = array<i64: 16, 128>}]} {
    %c0 = arith.constant 0 : index
    %c0_0 = arith.constant 0 : index
    %0 = vector.load %arg1[%c0, %c0_0] : memref<16x128xf32, #tpu.memory_space<vmem>>, vector<16x128xf32>
    %c0_1 = arith.constant 0 : index
    %c0_2 = arith.constant 0 : index
    %1 = vector.load %arg4[%c0_1, %c0_2] : memref<1x128xf32, #tpu.memory_space<vmem>>, vector<1x128xf32>
    %c0_3 = arith.constant 0 : index
    %c0_4 = arith.constant 0 : index
    %2 = vector.load %arg5[%c0_3, %c0_4] : memref<1x128xf32, #tpu.memory_space<vmem>>, vector<1x128xf32>
    %3 = vector.broadcast %1 : vector<1x128xf32> to vector<16x128xf32>
    %4 = arith.subf %0, %3 : vector<16x128xf32>
    %5 = arith.truncf %4 : vector<16x128xf32> to vector<16x128xbf16>
    %c0_5 = arith.constant 0 : index
    %c0_6 = arith.constant 0 : index
    %6 = vector.load %arg2[%c0_5, %c0_6] : memref<128x128xbf16, #tpu.memory_space<vmem>>, vector<128x128xbf16>
    %cst = arith.constant dense<0.000000e+00> : vector<16x128xf32>
    %7 = tpu.matmul %5, %6, %cst {dimension_numbers = #tpu.dot_dimension_numbers<[1], [0], [0], [1], [0, 0, 1, 1], [], []>} : vector<16x128xbf16>, vector<128x128xbf16>, vector<16x128xf32> -> vector<16x128xf32>
    %8 = vector.broadcast %2 : vector<1x128xf32> to vector<16x128xf32>
    %9 = arith.addf %7, %8 : vector<16x128xf32>
    %c0_i32 = arith.constant 0 : i32
    %cst_7 = arith.constant dense<0xFF800000> : vector<16xf32>
    %10 = vector.multi_reduction <maximumf>, %9, %cst_7 [1] : vector<16x128xf32> to vector<16xf32>
    %11 = vector.shape_cast %10 : vector<16xf32> to vector<16x1xf32>
    %12 = vector.broadcast %11 : vector<16x1xf32> to vector<16x128xf32>
    %13 = arith.cmpf oeq, %9, %12 : vector<16x128xf32>
    %cst_8 = arith.constant -3.40282347E+38 : f32
    %14 = vector.broadcast %cst_8 : f32 to vector<16x128xf32>
    %15 = arith.select %13, %14, %9 : vector<16x128xi1>, vector<16x128xf32>
    %c1_i32 = arith.constant 1 : i32
    %cst_9 = arith.constant dense<0xFF800000> : vector<16xf32>
    %16 = vector.multi_reduction <maximumf>, %15, %cst_9 [1] : vector<16x128xf32> to vector<16xf32>
    %17 = vector.shape_cast %16 : vector<16xf32> to vector<16x1xf32>
    %18 = vector.broadcast %17 : vector<16x1xf32> to vector<16x128xf32>
    %19 = arith.cmpf oeq, %15, %18 : vector<16x128xf32>
    %cst_10 = arith.constant -3.40282347E+38 : f32
    %20 = vector.broadcast %cst_10 : f32 to vector<16x128xf32>
    %21 = arith.select %19, %20, %15 : vector<16x128xi1>, vector<16x128xf32>
    %c2_i32 = arith.constant 2 : i32
    %cst_11 = arith.constant dense<0xFF800000> : vector<16xf32>
    %22 = vector.multi_reduction <maximumf>, %21, %cst_11 [1] : vector<16x128xf32> to vector<16xf32>
    %23 = vector.shape_cast %22 : vector<16xf32> to vector<16x1xf32>
    %24 = vector.broadcast %23 : vector<16x1xf32> to vector<16x128xf32>
    %25 = arith.cmpf oeq, %21, %24 : vector<16x128xf32>
    %cst_12 = arith.constant -3.40282347E+38 : f32
    %26 = vector.broadcast %cst_12 : f32 to vector<16x128xf32>
    %27 = arith.select %25, %26, %21 : vector<16x128xi1>, vector<16x128xf32>
    %cst_13 = arith.constant dense<0xFF800000> : vector<16xf32>
    %28 = vector.multi_reduction <maximumf>, %27, %cst_13 [1] : vector<16x128xf32> to vector<16xf32>
    %29 = vector.shape_cast %28 : vector<16xf32> to vector<16x1xf32>
    %30 = vector.broadcast %29 : vector<16x1xf32> to vector<16x128xf32>
    %31 = arith.cmpf oge, %9, %30 : vector<16x128xf32>
    %cst_14 = arith.constant 0.000000e+00 : f32
    %32 = vector.broadcast %cst_14 : f32 to vector<16x128xf32>
    %33 = arith.select %31, %9, %32 : vector<16x128xi1>, vector<16x128xf32>
    %34 = arith.truncf %33 : vector<16x128xf32> to vector<16x128xbf16>
    %c0_15 = arith.constant 0 : index
    %c0_16 = arith.constant 0 : index
    %35 = vector.load %arg3[%c0_15, %c0_16] : memref<128x128xbf16, #tpu.memory_space<vmem>>, vector<128x128xbf16>
    %cst_17 = arith.constant dense<0.000000e+00> : vector<16x128xf32>
    %36 = tpu.matmul %34, %35, %cst_17 {dimension_numbers = #tpu.dot_dimension_numbers<[1], [0], [0], [1], [0, 0, 1, 1], [], []>} : vector<16x128xbf16>, vector<128x128xbf16>, vector<16x128xf32> -> vector<16x128xf32>
    %37 = vector.broadcast %1 : vector<1x128xf32> to vector<16x128xf32>
    %38 = arith.addf %36, %37 : vector<16x128xf32>
    %c0_18 = arith.constant 0 : index
    %c0_19 = arith.constant 0 : index
    %39 = vector.load %arg6[%c0_18, %c0_19] : memref<16x128xf32, #tpu.memory_space<vmem>>, vector<16x128xf32>
    tpu.vector_store %arg6[%c0_18, %c0_19], %38 {strides = array<i32>} : memref<16x128xf32, #tpu.memory_space<vmem>>, vector<16x128xf32>,
    return
  }
  func.func @transform_0(%arg0: i32) -> (i32, i32) {
    %c0_i32 = arith.constant 0 : i32
    %c0_i32_0 = arith.constant 0 : i32
    return %arg0, %c0_i32 : i32, i32
  }
  func.func @transform_1(%arg0: i32) -> (i32, i32) {
    %c0_i32 = arith.constant 0 : i32
    %c0_i32_0 = arith.constant 0 : i32
    %c0_i32_1 = arith.constant 0 : i32
    return %c0_i32, %c0_i32_0 : i32, i32
  }
  func.func @transform_2(%arg0: i32) -> (i32, i32) {
    %c0_i32 = arith.constant 0 : i32
    %c0_i32_0 = arith.constant 0 : i32
    %c0_i32_1 = arith.constant 0 : i32
    return %c0_i32, %c0_i32_0 : i32, i32
  }
  func.func @transform_3(%arg0: i32) -> (i32, i32) {
    %c0_i32 = arith.constant 0 : i32
    %c0_i32_0 = arith.constant 0 : i32
    %c0_i32_1 = arith.constant 0 : i32
    return %c0_i32, %c0_i32_0 : i32, i32
  }
  func.func @transform_4(%arg0: i32) -> (i32, i32) {
    %c0_i32 = arith.constant 0 : i32
    %c0_i32_0 = arith.constant 0 : i32
    %c0_i32_1 = arith.constant 0 : i32
    return %c0_i32, %c0_i32_0 : i32, i32
  }
  func.func @transform_5(%arg0: i32) -> (i32, i32) {
    %c0_i32 = arith.constant 0 : i32
    %c0_i32_0 = arith.constant 0 : i32
    return %arg0, %c0_i32 : i32, i32
  }
}

</mosaic_0001>

<bundles_post_ra>
// kernel: tpu_custom_call.1
= control target key start
LH: loop header
LB: loop body
LE: loop exit
PB: predicated region body
PF: predicated region fallthrough
CT: control target
= control target key end

     0   :  { %10 = vsyncpa [#allocation3], 0  ;;  %s674_s0 = inlined_call_operand.hbm [shape: f32[16,128], index: 0, kind: input, shape index: {}]   ;;  %s675_s1 = inlined_call_operand.hbm [shape: bf16[128,128], index: 1, kind: input, shape index: {}]   ;;  %s676_s2 = inlined_call_operand.hbm [shape: bf16[128,128], index: 2, kind: input, shape index: {}]   ;;  %s677_s3 = inlined_call_operand.vmem [shape: f32[1,128], index: 3, kind: input, shape index: {}]   ;;  %s678_s4 = inlined_call_operand.vmem [shape: f32[1,128], index: 4, kind: input, shape index: {}]   ;;  %s679_s5 = inlined_call_operand.hbm [shape: f32[16,128], index: 5, kind: output, shape index: {}]  }
   0x1   :  { %11 = vsyncpa [#allocation6], 0 }
   0x2   :  { %12 = vsyncpa [#allocation4], 0  ;;  %s544_s18 = smov [#allocation5]   ;;  %s450_s22 = scalar_lea.hbm %s675_s1, 1024 }
   0x3   :  { %s30_s19 = sshll.u32 %s544_s18, 4  ;;  %p451_p0 = scmp.ne.s32.totalorder %s675_s1, %s450_s22  ;;  %s31_s19 = int_to_ptr.vmem [resolvable:$true] %s30_s19 }
   0x4   :  { %p454_p1 = scmp.lt.u32.totalorder %s450_s22, %s675_s1 }
   0x6   :  { %p456_p2 = pnand %p454_p1, %p451_p0 }
   0x8   :  { %459 = shalt.err (!%p456_p2)
}
   0x9   :  { %s460_s27 = scalar_lea.vmem %s31_s19, 1024  ;;  %p465_p4 = scmp.lt.s32.totalorder %s31_s19, %s31_s19 }
   0xa   :  { %p461_p3 = scmp.ne.s32.totalorder %s31_s19, %s460_s27  ;;  %p466_p5 = scmp.lt.s32.totalorder %s460_s27, %s460_s27 }
   0xc   :  { %p467_p6 = por %p466_p5, %p465_p4 }
   0xe   :  { %p468_p7 = pnand %p467_p6, %p461_p3 }
  0x10   :  { %471 = shalt.err (!%p468_p7)
}
  0x11   :  { %s545_s28 = smov 64   ;;  %s546_s29 = smov 4  }
  0x12   :  { %36 = dma.hbm_to_vmem [thread:$0]  %s675_s1, 1024, %s31_s19, [#allocation6], %s545_s28, %s545_s28, %s546_s29  }
  0x13   :  { %s547_s7 = smov [#allocation2]   ;;  %s472_s11 = scalar_lea.hbm %s674_s0, 256 }
  0x14   :  { %s18_s8 = sshll.u32 %s547_s7, 4  ;;  %p473_p8 = scmp.ne.s32.totalorder %s674_s0, %s472_s11  ;;  %s19_s8 = int_to_ptr.vmem [resolvable:$true] %s18_s8 }
  0x15   :  { %p476_p9 = scmp.lt.u32.totalorder %s472_s11, %s674_s0 }
  0x17   :  { %p478_p10 = pnand %p476_p9, %p473_p8 }
  0x19   :  { %481 = shalt.err (!%p478_p10)
}
  0x1a   :  { %s482_s16 = scalar_lea.vmem %s19_s8, 256  ;;  %p487_p12 = scmp.lt.s32.totalorder %s19_s8, %s19_s8 }
  0x1b   :  { %p483_p11 = scmp.ne.s32.totalorder %s19_s8, %s482_s16  ;;  %p488_p13 = scmp.lt.s32.totalorder %s482_s16, %s482_s16 }
  0x1d   :  { %p489_p0 = por %p488_p13, %p487_p12 }
  0x1f   :  { %p490_p1 = pnand %p489_p0, %p483_p11 }
  0x21   :  { %493 = shalt.err (!%p490_p1)
}
  0x22   :  { %s548_s1 = smov 128   ;;  %s549_s17 = smov 8  }
  0x23   :  { %24 = dma.hbm_to_vmem [thread:$0]  %s674_s0, 256, %s19_s8, [#allocation3], %s548_s1, %s548_s1, %s549_s17  }
  0x24   :  { %s550_s20 = smov [#allocation7]   ;;  %s494_s24 = scalar_lea.hbm %s676_s2, 1024 }
  0x25   :  { %s42_s21 = sshll.u32 %s550_s20, 4  ;;  %p495_p2 = scmp.ne.s32.totalorder %s676_s2, %s494_s24  ;;  %s43_s21 = int_to_ptr.vmem [resolvable:$true] %s42_s21 }
  0x26   :  { %p498_p3 = scmp.lt.u32.totalorder %s494_s24, %s676_s2 }
  0x28   :  { %p500_p4 = pnand %p498_p3, %p495_p2 }
  0x2a   :  { %503 = shalt.err (!%p500_p4)
}
  0x2b   :  { %s504_s6 = scalar_lea.vmem %s43_s21, 1024  ;;  %p509_p6 = scmp.lt.s32.totalorder %s43_s21, %s43_s21 }
  0x2c   :  { %p505_p5 = scmp.ne.s32.totalorder %s43_s21, %s504_s6  ;;  %p510_p7 = scmp.lt.s32.totalorder %s504_s6, %s504_s6 }
  0x2e   :  { %p511_p8 = por %p510_p7, %p509_p6 }
  0x30   :  { %p512_p9 = pnand %p511_p8, %p505_p5 }
  0x32   :  { %515 = shalt.err (!%p512_p9)
}
  0x33   :  { %48 = dma.hbm_to_vmem [thread:$0]  %s676_s2, 1024, %s43_s21, [#allocation6], %s545_s28, %s545_s28, %s546_s29  }
  0x34   :  { %538 = dma.done.wait [#allocation3], 256  }
  0x35   :  { %539 = vsyncadd [#allocation3], 4294967040 }
  0x36   :  { %540 = dma.done.wait [#allocation6], 2048  }
  0x37   :  { %541 = vsyncadd [#allocation6], 4294965248  ;;  %v551_v0 = vmov 0.0   ;;  %vm552_vm0 = vmmov 0   ;;  %v434_v1 = vld [vmem:[#allocation5] sm:$0xff]   ;;  %v435_v2 = vld [vmem:[#allocation5 + $0x8] sm:$0xff]  }
  0x38   :  { %384 = vmatprep.subr.bf16.mxu0 %v551_v0  ;;  %400 = vmatprep.mubr.msk.bf16.mxu0 %vm552_vm0, %v551_v0  ;;  %v436_v3 = vld [vmem:[#allocation5 + $0x10] sm:$0xff]   ;;  %v437_v4 = vld [vmem:[#allocation5 + $0x18] sm:$0xff]   ;;  %v438_v5 = vld [vmem:[#allocation5 + $0x20] sm:$0xff]  }
  0x39   :  { %404 = vmatprep.subr.bf16.mxu1 %v551_v0  ;;  %420 = vmatprep.mubr.msk.bf16.mxu1 %vm552_vm0, %v551_v0  ;;  %v439_v6 = vld [vmem:[#allocation5 + $0x28] sm:$0xff]   ;;  %v440_v7 = vld [vmem:[#allocation5 + $0x30] sm:$0xff]   ;;  %v64_v9 = vld [vmem:[#allocation2 + $0x8] sm:$0xff] }
  0x3a   :  { %385 = vmatpush3.bf16.msra.mxu0 %v434_v1  ;;  %v63_v8 = vld [vmem:[#allocation2] sm:$0xff]  ;;  %v441_v13 = vld [vmem:[#allocation5 + $0x38] sm:$0xff]   ;;  %v442_v30 = vld [vmem:[#allocation7] sm:$0xff]  }
  0x3b   :  { %386 = vmatprep.subr.bf16.mxu0 %v551_v0  ;;  %v641_v10 = vld [vmem:[%s677_s3] ss:$0 sm:$0xff]  ;;  %405 = vmatpush3.bf16.msra.mxu1 %v442_v30  ;;  %v443_v31 = vld [vmem:[#allocation7 + $0x8] sm:$0xff]   ;;  %v445_v33 = vld [vmem:[#allocation7 + $0x18] sm:$0xff]   ;;  %s553_s3 = smov [#allocation8]  }
  0x3c   :  { %v73_v11 = vsub.f32 %v63_v8, %v641_v10  ;;  %v74_v12 = vsub.f32 %v64_v9, %v641_v10  ;;  %v346_v15 = vld [vmem:[%s678_s4] ss:$0 sm:$0xff]  ;;  %406 = vmatprep.subr.bf16.mxu1 %v551_v0  ;;  %v446_v34 = vld [vmem:[#allocation7 + $0x20] sm:$0xff]   ;;  %v447_v35 = vld [vmem:[#allocation7 + $0x28] sm:$0xff]   ;;  %s332_s4 = sshll.u32 %s553_s3, 4  ;;  %s333_s4 = int_to_ptr.vmem [resolvable:$true] %s332_s4 }
  0x3d   :  { %v444_v32 = vld [vmem:[#allocation7 + $0x10] sm:$0xff]   ;;  %v449_v41 = vld [vmem:[#allocation7 + $0x38] sm:$0xff]   ;;  %s516_s9 = scalar_lea.vmem %s333_s4, 256  ;;  %p521_p11 = scmp.lt.s32.totalorder %s333_s4, %s333_s4 }
  0x3e   :  { %387 = vmatpush3.bf16.msra.mxu0 %v435_v2  ;;  %v75_v14 = vpack.c.bf16 %v74_v12, %v73_v11  ;;  %v448_v36 = vld [vmem:[#allocation7 + $0x30] sm:$0xff]   ;;  %p517_p10 = scmp.ne.s32.totalorder %s333_s4, %s516_s9  ;;  %p522_p12 = scmp.lt.s32.totalorder %s516_s9, %s516_s9 }
  0x3f   :  { %388 = vmatprep.subr.bf16.mxu0 %v551_v0  ;;  %407 = vmatpush3.bf16.msra.mxu1 %v443_v31 }
  0x40   :  { %408 = vmatprep.subr.bf16.mxu1 %v551_v0  ;;  %p523_p13 = por %p522_p12, %p521_p11 }
  0x42   :  { %389 = vmatpush3.bf16.msra.mxu0 %v436_v3  ;;  %p524_p0 = pnand %p523_p13, %p517_p10 }
  0x43   :  { %390 = vmatprep.subr.bf16.mxu0 %v551_v0  ;;  %409 = vmatpush3.bf16.msra.mxu1 %v444_v32 }
  0x44   :  { %410 = vmatprep.subr.bf16.mxu1 %v551_v0 }
  0x46   :  { %391 = vmatpush3.bf16.msra.mxu0 %v437_v4 }
  0x47   :  { %392 = vmatprep.subr.bf16.mxu0 %v551_v0  ;;  %411 = vmatpush3.bf16.msra.mxu1 %v445_v33 }
  0x48   :  { %412 = vmatprep.subr.bf16.mxu1 %v551_v0 }
  0x4a   :  { %393 = vmatpush3.bf16.msra.mxu0 %v438_v5 }
  0x4b   :  { %394 = vmatprep.subr.bf16.mxu0 %v551_v0  ;;  %413 = vmatpush3.bf16.msra.mxu1 %v446_v34 }
  0x4c   :  { %414 = vmatprep.subr.bf16.mxu1 %v551_v0 }
  0x4e   :  { %395 = vmatpush3.bf16.msra.mxu0 %v439_v6 }
  0x4f   :  { %396 = vmatprep.subr.bf16.mxu0 %v551_v0  ;;  %415 = vmatpush3.bf16.msra.mxu1 %v447_v35 }
  0x50   :  { %416 = vmatprep.subr.bf16.mxu1 %v551_v0 }
  0x52   :  { %397 = vmatpush3.bf16.msra.mxu0 %v440_v7 }
  0x53   :  { %398 = vmatprep.subr.bf16.mxu0 %v551_v0  ;;  %417 = vmatpush3.bf16.msra.mxu1 %v448_v36 }
  0x54   :  { %418 = vmatprep.subr.bf16.mxu1 %v551_v0 }
  0x56   :  { %399 = vmatpush3.bf16.msra.mxu0 %v441_v13 }
  0x57   :  { %419 = vmatpush3.bf16.msra.mxu1 %v449_v41 }
  0x59   :  { %401 = vmatmul.mubr.bf16.vlgmr.msra.gmra.mrb[0].mxu0 %v75_v14 }
 0x12c   :  { %v180_v16 = vpop.f32.mrb[0].mxu0 }
 0x12d   :  { %v181_v17 = vadd.f32 %v346_v15, %v180_v16  ;;  %v402_v18 = vpop.f32.mrb[1].mxu0 }
 0x12e   :  { %v183_v19 = vpop.f32.mrb[2].mxu0 }
 0x12f   :  { %187 = vmax.xlane.f32.xlu0 %v181_v17  ;;  %v403_v20 = vpop.f32.mrb[3].mxu0  ;;  %v184_v21 = vadd.f32 %v346_v15, %v183_v19 }
 0x131   :  { %v364_v44 = vpack.c.bf16 %v184_v21, %v181_v17 }
 0x133   :  { %189 = vmax.xlane.f32.xlu0 %v184_v21 }
 0x1bc   :  { %v188_v22 = vpop.xlane.xlu0 %187 }
 0x1bd   :  { %vm191_vm1 = vcmp.eq.f32.partialorder %v181_v17, %v188_v22 }
 0x1be   :  { %v193_v23 = vsel %vm191_vm1, -3.4028235e+38, %v181_v17 }
 0x1bf   :  { %195 = vmax.xlane.f32.xlu1 %v193_v23 }
 0x1c0   :  { %v190_v24 = vpop.xlane.xlu0 %189 }
 0x1c1   :  { %vm192_vm2 = vcmp.eq.f32.partialorder %v184_v21, %v190_v24 }
 0x1c2   :  { %v194_v25 = vsel %vm192_vm2, -3.4028235e+38, %v184_v21 }
 0x1c3   :  { %197 = vmax.xlane.f32.xlu1 %v194_v25 }
 0x24c   :  { %v196_v26 = vpop.xlane.xlu1 %195 }
 0x24d   :  { %vm199_vm3 = vcmp.eq.f32.partialorder %v193_v23, %v196_v26 }
 0x24e   :  { %v201_v27 = vsel %vm199_vm3, -3.4028235e+38, %v193_v23 }
 0x24f   :  { %203 = vmax.xlane.f32.xlu0 %v201_v27 }
 0x250   :  { %v198_v28 = vpop.xlane.xlu1 %197 }
 0x251   :  { %vm200_vm4 = vcmp.eq.f32.partialorder %v194_v25, %v198_v28 }
 0x252   :  { %v202_v29 = vsel %vm200_vm4, -3.4028235e+38, %v194_v25 }
 0x253   :  { %205 = vmax.xlane.f32.xlu1 %v202_v29 }
 0x2dc   :  { %v204_v37 = vpop.xlane.xlu0 %203 }
 0x2dd   :  { %vm207_vm5 = vcmp.eq.f32.partialorder %v201_v27, %v204_v37 }
 0x2de   :  { %v209_v38 = vsel %vm207_vm5, -3.4028235e+38, %v201_v27 }
 0x2df   :  { %211 = vmax.xlane.f32.xlu0 %v209_v38 }
 0x2e0   :  { %v206_v39 = vpop.xlane.xlu1 %205 }
 0x2e1   :  { %vm208_vm6 = vcmp.eq.f32.partialorder %v202_v29, %v206_v39 }
 0x2e2   :  { %v210_v40 = vsel %vm208_vm6, -3.4028235e+38, %v202_v29 }
 0x2e3   :  { %213 = vmax.xlane.f32.xlu1 %v210_v40 }
 0x36c   :  { %v212_v42 = vpop.xlane.xlu0 %211 }
 0x36d   :  { %vm215_vm7 = vcmp.ge.f32.partialorder %v181_v17, %v212_v42 }
 0x370   :  { %v214_v43 = vpop.xlane.xlu1 %213 }
 0x371   :  { %vm216_vm8 = vcmp.ge.f32.partialorder %v184_v21, %v214_v43 }
 0x372   :  { %vm363_vm9 = vmpackc.low %vm216_vm8, %vm215_vm7 }
 0x373   :  { %421 = vmatmul.mubr.msk.bf16.vlgmr.msra.gmra.mrb[0].mxu1 %vm363_vm9, %v364_v44 }
 0x446   :  { %v318_v45 = vpop.f32.mrb[0].mxu1 }
 0x447   :  { %v319_v46 = vadd.f32 %v641_v10, %v318_v45  ;;  %v422_v47 = vpop.f32.mrb[1].mxu1 }
 0x448   :  { %v321_v48 = vpop.f32.mrb[2].mxu1 }
 0x449   :  { %325 = vst [vmem:[#allocation8] sm:$0xff] %v319_v46  ;;  %v322_v49 = vadd.f32 %v641_v10, %v321_v48  ;;  %v423_v50 = vpop.f32.mrb[3].mxu1 }
 0x44b   :  { %326 = vst [vmem:[#allocation8 + $0x8] sm:$0xff] %v322_v49 }
 0x44c   :  { %527 = shalt.err (!%p524_p0)
}
 0x44d   :  { %s528_s12 = scalar_lea.hbm %s679_s5, 256 }
 0x44e   :  { %p529_p1 = scmp.ne.s32.totalorder %s679_s5, %s528_s12  ;;  %p532_p2 = scmp.lt.u32.totalorder %s528_s12, %s679_s5 }
 0x450   :  { %p534_p3 = pnand %p532_p2, %p529_p1 }
 0x452   :  { %537 = shalt.err (!%p534_p3)
}
 0x453   :  { %338 = dma.vmem_to_hbm [thread:$0]  %s333_s4, 256, %s679_s5, [#allocation4], %s548_s1, %s548_s1, %s549_s17  }
 0x454   :  { %542 = dma.done.wait [#allocation4], 256  }
 0x455   :  { %543 = vsyncadd [#allocation4], 4294967040 }
 0x456   :  { %342 = vsyncpa [#allocation3], 1 }
 0x457   :  { %343 = vsyncpa [#allocation6], 1 }
 0x458   :  { %344 = vsyncpa [#allocation4], 1 }

</bundles_post_ra>
